<compile_context>
chip_gen: v5e
topology: v5e:2x2
jax: 0.10.0
libtpu: 0.0.40
codegen_flags: <defaults>
</compile_context>

<pallas_src>
import functools

import jax
import jax.numpy as jnp
from jax.experimental import pallas as pl
from jax.experimental.pallas import tpu as pltpu


def _round_up(x, m):
    return (x + m - 1) // m * m


# ----------------------------------------------------------------------------
# Pallas kernel: one grid step == one hyper-layer (fused net_w + net_b MLP)
# ----------------------------------------------------------------------------
def _make_gen_kernel(B, T_pad, E, C, HF, DF, R2, R3):
    def kernel(emb_ref, cmd_ref, w_ref, b_ref, out_ref):
        emb = emb_ref[0]                      # (T_pad, E)   per-layer embeddings
        cmd = cmd_ref[...]                    # (B, C)       command (+conditioning)
        w = w_ref[0]                          # (RW, DF)     fused weight slab
        bias = b_ref[0]                       # (8, DF)      fused bias slab

        w1e = w[0:E, 0:HF]                    # W1 rows hit by the embedding part
        w1c = w[E:E + C, 0:HF]                # W1 rows hit by the command part
        w2 = w[R2:R2 + HF, 0:HF]              # block-diag(W2w, W2b)
        w3 = w[R3:R3 + HF, 0:DF]              # block-diag(W3w, W3b)
        b1 = bias[0:1, 0:HF]
        b2 = bias[1:2, 0:HF]
        b3 = bias[2:3, 0:DF]

        # x = cat(broadcast(emb), broadcast(cmd)); distribute the broadcast
        # through the first linear layer -> no replicated x in HBM or VMEM.
        he = jnp.dot(emb, w1e, preferred_element_type=jnp.float32)   # (T_pad, HF)
        hc = jnp.dot(cmd, w1c, preferred_element_type=jnp.float32)   # (B, HF)

        # Row order b-major / tile-minor, matching the reference reshape.
        h1 = jnp.concatenate([he + hc[b:b + 1, :] for b in range(B)], axis=0)
        h1 = jnp.maximum(h1 + b1, 0.0)                               # (B*T_pad, HF)
        h2 = jnp.maximum(
            jnp.dot(h1, w2, preferred_element_type=jnp.float32) + b2, 0.0)
        out_ref[0] = jnp.dot(h2, w3, preferred_element_type=jnp.float32) + b3

    return kernel


def _fused_generator_hn(emb_all, cmd, w_slab, b_slab, dims):
    """Single pallas_call over all hyper-layers. Returns (L, B*T_pad, DF)."""
    L, T_pad, E = emb_all.shape
    B, C = cmd.shape
    RW, DF = w_slab.shape[1], w_slab.shape[2]
    HF, R2, R3 = dims["HF"], dims["R2"], dims["R3"]
    NP = B * T_pad

    flops = 2 * L * (T_pad * E * HF + B * C * HF + NP * HF * HF + NP * HF * DF)
    bytes_accessed = 4 * (emb_all.size + cmd.size + w_slab.size + b_slab.size
                          + L * NP * DF)

    kernel = _make_gen_kernel(B, T_pad, E, C, HF, DF, R2, R3)
    return pl.pallas_call(
        kernel,
        out_shape=jax.ShapeDtypeStruct((L, NP, DF), jnp.float32),
        grid_spec=pltpu.PrefetchScalarGridSpec(
            num_scalar_prefetch=0,
            grid=(L,),
            in_specs=[
                pl.BlockSpec((1, T_pad, E), lambda i: (i, 0, 0)),   # embeddings
                pl.BlockSpec((B, C), lambda i: (0, 0)),             # command
                pl.BlockSpec((1, RW, DF), lambda i: (i, 0, 0)),     # weight slab
                pl.BlockSpec((1, 8, DF), lambda i: (i, 0, 0)),      # bias slab
            ],
            out_specs=pl.BlockSpec((1, NP, DF), lambda i: (i, 0, 0)),
        ),
        compiler_params=pltpu.CompilerParams(
            dimension_semantics=("arbitrary",)),
        cost_estimate=pl.CostEstimate(flops=flops, transcendentals=0,
                                      bytes_accessed=bytes_accessed),
    )(emb_all, cmd, w_slab, b_slab)


# ----------------------------------------------------------------------------
# Parameter packing: block-diag fusion of net_w/net_b + stacking over layers
# ----------------------------------------------------------------------------
def _block_diag(a, b):
    top = jnp.concatenate([a, jnp.zeros((a.shape[0], b.shape[1]), a.dtype)], axis=1)
    bot = jnp.concatenate([jnp.zeros((b.shape[0], a.shape[1]), b.dtype), b], axis=1)
    return jnp.concatenate([top, bot], axis=0)


def pack_hn_slabs(hns):
    """Fuse each HyperNetwork's net_w / net_b into block-diagonal weights and
    stack all hyper-layers into one weight slab and one bias slab."""
    (W1w0, _), (_, _), (W3w0, _) = hns[0]["net_w"]
    z, H = W1w0.shape
    DW = W3w0.shape[1]
    DB = hns[0]["net_b"][-1][0].shape[1]
    HF, DF = 2 * H, DW + DB
    R2 = _round_up(z, 8)
    R3 = R2 + HF
    RW = R3 + HF

    w_layers, b_layers = [], []
    for hn in hns:
        (W1w, b1w), (W2w, b2w), (W3w, b3w) = hn["net_w"]
        (W1b, b1b), (W2b, b2b), (W3b, b3b) = hn["net_b"]
        assert W1w.shape == (z, H) and W1b.shape == (z, H)

        W1f = jnp.concatenate([W1w, W1b], axis=1)          # (z,  HF)
        W2f = _block_diag(W2w, W2b)                        # (HF, HF)
        W3f = _block_diag(W3w, W3b)                        # (HF, DF)

        slab = jnp.zeros((RW, DF), jnp.float32)
        slab = slab.at[0:z, 0:HF].set(W1f)
        slab = slab.at[R2:R2 + HF, 0:HF].set(W2f)
        slab = slab.at[R3:R3 + HF, 0:DF].set(W3f)

        bias = jnp.zeros((8, DF), jnp.float32)
        bias = bias.at[0, 0:HF].set(jnp.concatenate([b1w, b1b], axis=1)[0])
        bias = bias.at[1, 0:HF].set(jnp.concatenate([b2w, b2b], axis=1)[0])
        bias = bias.at[2, 0:DF].set(jnp.concatenate([b3w, b3b], axis=1)[0])

        w_layers.append(slab)
        b_layers.append(bias)

    dims = dict(z=z, H=H, HF=HF, DW=DW, DB=DB, DF=DF, R2=R2, R3=R3, RW=RW)
    return jnp.stack(w_layers), jnp.stack(b_layers), dims


# ----------------------------------------------------------------------------
# Deterministic parameter init (shapes from HyperNetwork / Generator __init__)
# ----------------------------------------------------------------------------
def init_linear(key, din, dout):
    kw, kb = jax.random.split(key)
    bound = 1.0 / jnp.sqrt(jnp.float32(din))
    W = jax.random.uniform(kw, (din, dout), jnp.float32, -bound, bound)
    b = jax.random.uniform(kb, (1, dout), jnp.float32, -bound, bound)
    return W, b


def init_hypernetwork(key, z_dim, hidden_sizes, out_size_w=(8, 8), out_size_b=8):
    sizes_w = [z_dim] + list(hidden_sizes) + [out_size_w[0] * out_size_w[1]]
    sizes_b = [z_dim] + list(hidden_sizes) + [out_size_b]
    n_w, n_b = len(sizes_w) - 1, len(sizes_b) - 1
    keys = jax.random.split(key, n_w + n_b)
    net_w = [init_linear(keys[j], sizes_w[j], sizes_w[j + 1]) for j in range(n_w)]
    net_b = [init_linear(keys[n_w + j], sizes_b[j], sizes_b[j + 1]) for j in range(n_b)]
    return {"net_w": net_w, "net_b": net_b}


# ----------------------------------------------------------------------------
# HyperNetworkGenerator.forward — fused Pallas path (jit-friendly)
# ----------------------------------------------------------------------------
def _collect_layers(params, in_tiling, hidden_tiling, out_tiling):
    num_layers = 1
    if hidden_tiling is not None:
        num_layers += len(hidden_tiling)
    if out_tiling is not None:
        num_layers += 1
    layers = []
    for i in range(num_layers):
        if i == 0:
            hn, tiling, emb = params["input_hn"], in_tiling, params["in_embeddings"]
        elif i == num_layers - 1:
            hn, tiling, emb = params["output_hn"], out_tiling, params["out_embeddings"]
        else:
            hn, tiling, emb = (params["hidden_hn"], hidden_tiling[i - 1],
                               params["hidden_embeddings"][i - 1])
        layers.append((hn, (int(tiling[0]), int(tiling[1])), emb))
    return layers


def generator_forward(command, conditioning, params,
                      in_tiling, hidden_tiling, out_tiling, out_size_w,
                      layer_sizes, scale_layer_out, scale_parameter):
    B = command.shape[0]
    if conditioning is not None:
        command = jnp.concatenate([command, conditioning], axis=1)
    command = command.astype(jnp.float32)

    layers = _collect_layers(params, in_tiling, hidden_tiling, out_tiling)
    E = layers[0][2].shape[-1]
    # Pad tile counts to a common, sublane-aligned row count per layer.
    T_pad = _round_up(max(t0 * t1 for _, (t0, t1), _ in layers), 8)

    # Lane-dense slabs (2 DMAs / layer) + stacked, zero-padded embeddings.
    w_slab, b_slab, d = pack_hn_slabs([hn for hn, _, _ in layers])
    emb_all = jnp.stack([
        jnp.pad(emb.reshape(-1, E).astype(jnp.float32),
                ((0, T_pad - t0 * t1), (0, 0)))
        for _, (t0, t1), emb in layers])                       # (L, T_pad, E)

    out = _fused_generator_hn(emb_all, command, w_slab, b_slab, d)
    # out: (L, B*T_pad, DF) with rows b-major / tile-minor.

    DW, DB, DF = d["DW"], d["DB"], d["DF"]
    w0, w1 = out_size_w

    generated = []
    for i, (_, (t0, t1), _) in enumerate(layers):
        T_i = t0 * t1
        o = out[i].reshape(B, T_pad, DF)[:, :T_i, :]
        w = o[..., :DW]
        b = o[..., DW:DW + DB]
        if scale_layer_out:
            s = scale_parameter / jnp.sqrt(jnp.float32(layer_sizes[i]))
            w = w * s
            b = b * s
        w = (w.reshape(B, t0, t1, w0, w1)
              .transpose(0, 2, 3, 1, 4)
              .reshape(B, t1 * w0, t0 * w1))
        b = b.reshape(B, t0, t1, w0).mean(axis=1).reshape(B, t1 * w0)
        generated.extend([w, b])

    flat = [p.reshape(p.shape[0], -1) for p in generated]
    return jnp.concatenate(flat, axis=1)


# ----------------------------------------------------------------------------
# Pure-JAX reference (mirrors the PyTorch module exactly) for the self-check
# ----------------------------------------------------------------------------
def _hn_ref(x, hn):
    def run(layers_):
        h = x
        for j, (W, b) in enumerate(layers_):
            h = h @ W + b
            if j < len(layers_) - 1:
                h = jnp.maximum(h, 0.0)
        return h
    return run(hn["net_w"]), run(hn["net_b"])


def generator_forward_ref(command, conditioning, params,
                          in_tiling, hidden_tiling, out_tiling, out_size_w,
                          layer_sizes, scale_layer_out, scale_parameter):
    B = command.shape[0]
    if conditioning is not None:
        command = jnp.concatenate([command, conditioning], axis=1)
    command = command.astype(jnp.float32)

    layers = _collect_layers(params, in_tiling, hidden_tiling, out_tiling)
    C = command.shape[-1]
    w0, w1 = out_size_w

    generated = []
    for i, (hn, (t0, t1), emb) in enumerate(layers):
        E = emb.shape[-1]
        z = jnp.broadcast_to(emb[None], (B, t0, t1, E)).reshape(-1, E)
        rc = jnp.broadcast_to(command[:, None, None, :], (B, t0, t1, C)).reshape(-1, C)
        x = jnp.concatenate([z, rc], axis=1).astype(jnp.float32)
        w, b = _hn_ref(x, hn)
        if scale_layer_out:
            s = scale_parameter / jnp.sqrt(jnp.float32(layer_sizes[i]))
            w = w * s
            b = b * s
        w = (w.reshape(B, t0, t1, w0, w1)
              .transpose(0, 2, 3, 1, 4)
              .reshape(B, t1 * w0, t0 * w1))
        b = b.reshape(B, t0, t1, w0).mean(axis=1).reshape(B, t1 * w0)
        generated.extend([w, b])

    flat = [p.reshape(p.shape[0], -1) for p in generated]
    return jnp.concatenate(flat, axis=1)


# ----------------------------------------------------------------------------
# Main
# ----------------------------------------------------------------------------
if __name__ == "__main__":
    key = jax.random.PRNGKey(0)
    keys = jax.random.split(key, 8)

    # Small, self-consistent configuration (HyperNetwork input dim must equal
    # embedding_dim + command_dim + conditioning_dim).
    B = 2
    embedding_dim = 32
    cmd_dim, cond_dim = 1, 3
    z_dim = embedding_dim + cmd_dim + cond_dim            # 36
    hidden_sizes = (32, 32)
    out_size_w = (8, 8)
    in_tiling = [1, 1]
    hidden_tiling = [[2, 2]]
    out_tiling = [1, 2]
    layer_sizes = [z_dim, 64, 64]

    params = {
        "input_hn": init_hypernetwork(keys[0], z_dim, hidden_sizes, out_size_w),
        "hidden_hn": init_hypernetwork(keys[1], z_dim, hidden_sizes, out_size_w),
        "output_hn": init_hypernetwork(keys[2], z_dim, hidden_sizes, out_size_w),
        "in_embeddings": jax.random.normal(
            keys[3], tuple(in_tiling) + (embedding_dim,), jnp.float32),
        "out_embeddings": jax.random.normal(
            keys[4], tuple(out_tiling) + (embedding_dim,), jnp.float32),
        "hidden_embeddings": [jax.random.normal(
            keys[5], tuple(hidden_tiling[0]) + (embedding_dim,), jnp.float32)],
    }

    command = jax.random.normal(keys[6], (B, cmd_dim), jnp.float32)
    conditioning = jax.random.normal(keys[7], (B, cond_dim), jnp.float32)

    # Whole forward (param packing + fused Pallas kernel + output glue) in ONE jit.
    fwd = jax.jit(functools.partial(
        generator_forward,
        in_tiling=in_tiling, hidden_tiling=hidden_tiling, out_tiling=out_tiling,
        out_size_w=out_size_w, layer_sizes=layer_sizes,
        scale_layer_out=True, scale_parameter=1.0))

    out = jax.block_until_ready(fwd(command, conditioning, params))

    # Silent self-check against a pure-JAX reference of the same math.
    ref = generator_forward_ref(command, conditioning, params,
                                in_tiling, hidden_tiling, out_tiling, out_size_w,
                                layer_sizes, scale_layer_out=True,
                                scale_parameter=1.0)

    # Expected flat size: (8*8+8) + (16*16+16) + (16*8+16) = 72 + 272 + 144 = 488
    assert out.shape == (B, 488), out.shape
    assert jnp.allclose(out, ref, atol=1e-4, rtol=1e-4)

    print("KERNEL_OK")
</pallas_src>

<mosaic_0001>
module attributes {stable_mosaic.version = 11 : i64} {
  func.func @kernel(%arg0: i32, %arg1: memref<1x8x32xf32, #tpu.memory_space<vmem>>, %arg2: memref<2x4xf32, #tpu.memory_space<vmem>>, %arg3: memref<1x168x72xf32, #tpu.memory_space<vmem>>, %arg4: memref<1x8x72xf32, #tpu.memory_space<vmem>>, %arg5: memref<1x16x72xf32, #tpu.memory_space<vmem>>) attributes {dimension_semantics = [#tpu.dimension_semantics<arbitrary>], iteration_bounds = array<i64: 3>, scalar_prefetch = 0 : i64, scratch_operands = 0 : i64, tpu.core_type = #tpu.core_type<tc>, window_params = [{transform_indices = @transform_0, window_bounds = array<i64: 1, 8, 32>}, {pipeline_mode = #tpu.pipeline_mode<synchronous>, transform_indices = @transform_1, window_bounds = array<i64: 2, 4>}, {transform_indices = @transform_2, window_bounds = array<i64: 1, 168, 72>}, {transform_indices = @transform_3, window_bounds = array<i64: 1, 8, 72>}, {transform_indices = @transform_4, window_bounds = array<i64: 1, 16, 72>}]} {
    %c0 = arith.constant 0 : index
    %c0_0 = arith.constant 0 : index
    %c0_1 = arith.constant 0 : index
    %0 = vector.load %arg1[%c0, %c0_0, %c0_1] : memref<1x8x32xf32, #tpu.memory_space<vmem>>, vector<1x8x32xf32>
    %1 = vector.shape_cast %0 : vector<1x8x32xf32> to vector<8x32xf32>
    %c0_2 = arith.constant 0 : index
    %c0_3 = arith.constant 0 : index
    %2 = vector.load %arg2[%c0_2, %c0_3] : memref<2x4xf32, #tpu.memory_space<vmem>>, vector<2x4xf32>
    %c0_4 = arith.constant 0 : index
    %c0_5 = arith.constant 0 : index
    %c0_6 = arith.constant 0 : index
    %3 = vector.load %arg3[%c0_4, %c0_5, %c0_6] : memref<1x168x72xf32, #tpu.memory_space<vmem>>, vector<1x168x72xf32>
    %4 = vector.shape_cast %3 : vector<1x168x72xf32> to vector<168x72xf32>
    %c0_7 = arith.constant 0 : index
    %c0_8 = arith.constant 0 : index
    %c0_9 = arith.constant 0 : index
    %5 = vector.load %arg4[%c0_7, %c0_8, %c0_9] : memref<1x8x72xf32, #tpu.memory_space<vmem>>, vector<1x8x72xf32>
    %6 = vector.shape_cast %5 : vector<1x8x72xf32> to vector<8x72xf32>
    %7 = vector.extract_strided_slice %4 {offsets = [0, 0], sizes = [32, 64], strides = [1, 1]} : vector<168x72xf32> to vector<32x64xf32>
    %8 = vector.extract_strided_slice %4 {offsets = [32, 0], sizes = [4, 64], strides = [1, 1]} : vector<168x72xf32> to vector<4x64xf32>
    %9 = vector.extract_strided_slice %4 {offsets = [40, 0], sizes = [64, 64], strides = [1, 1]} : vector<168x72xf32> to vector<64x64xf32>
    %10 = vector.extract_strided_slice %4 {offsets = [104, 0], sizes = [64, 72], strides = [1, 1]} : vector<168x72xf32> to vector<64x72xf32>
    %11 = vector.extract_strided_slice %6 {offsets = [0, 0], sizes = [1, 64], strides = [1, 1]} : vector<8x72xf32> to vector<1x64xf32>
    %12 = vector.extract_strided_slice %6 {offsets = [1, 0], sizes = [1, 64], strides = [1, 1]} : vector<8x72xf32> to vector<1x64xf32>
    %13 = vector.extract_strided_slice %6 {offsets = [2, 0], sizes = [1, 72], strides = [1, 1]} : vector<8x72xf32> to vector<1x72xf32>
    %cst = arith.constant dense<0.000000e+00> : vector<8x64xf32>
    %14 = tpu.matmul %1, %7, %cst {dimension_numbers = #tpu.dot_dimension_numbers<[1], [0], [0], [1], [0, 0, 1, 1], [], []>} : vector<8x32xf32>, vector<32x64xf32>, vector<8x64xf32> -> vector<8x64xf32>
    %cst_10 = arith.constant dense<0.000000e+00> : vector<2x64xf32>
    %15 = tpu.matmul %2, %8, %cst_10 {dimension_numbers = #tpu.dot_dimension_numbers<[1], [0], [0], [1], [0, 0, 1, 1], [], []>} : vector<2x4xf32>, vector<4x64xf32>, vector<2x64xf32> -> vector<2x64xf32>
    %16 = vector.extract_strided_slice %15 {offsets = [0, 0], sizes = [1, 64], strides = [1, 1]} : vector<2x64xf32> to vector<1x64xf32>
    %17 = vector.broadcast %16 : vector<1x64xf32> to vector<8x64xf32>
    %18 = arith.addf %14, %17 : vector<8x64xf32>
    %19 = vector.extract_strided_slice %15 {offsets = [1, 0], sizes = [1, 64], strides = [1, 1]} : vector<2x64xf32> to vector<1x64xf32>
    %20 = vector.broadcast %19 : vector<1x64xf32> to vector<8x64xf32>
    %21 = arith.addf %14, %20 : vector<8x64xf32>
    %22 = tpu.concatenate %18, %21 in 0 : vector<8x64xf32>, vector<8x64xf32> -> vector<16x64xf32>
    %23 = vector.broadcast %11 : vector<1x64xf32> to vector<16x64xf32>
    %24 = arith.addf %22, %23 : vector<16x64xf32>
    %cst_11 = arith.constant 0.000000e+00 : f32
    %25 = vector.broadcast %cst_11 : f32 to vector<16x64xf32>
    %26 = arith.maximumf %24, %25 : vector<16x64xf32>
    %cst_12 = arith.constant dense<0.000000e+00> : vector<16x64xf32>
    %27 = tpu.matmul %26, %9, %cst_12 {dimension_numbers = #tpu.dot_dimension_numbers<[1], [0], [0], [1], [0, 0, 1, 1], [], []>} : vector<16x64xf32>, vector<64x64xf32>, vector<16x64xf32> -> vector<16x64xf32>
    %28 = vector.broadcast %12 : vector<1x64xf32> to vector<16x64xf32>
    %29 = arith.addf %27, %28 : vector<16x64xf32>
    %cst_13 = arith.constant 0.000000e+00 : f32
    %30 = vector.broadcast %cst_13 : f32 to vector<16x64xf32>
    %31 = arith.maximumf %29, %30 : vector<16x64xf32>
    %cst_14 = arith.constant dense<0.000000e+00> : vector<16x72xf32>
    %32 = tpu.matmul %31, %10, %cst_14 {dimension_numbers = #tpu.dot_dimension_numbers<[1], [0], [0], [1], [0, 0, 1, 1], [], []>} : vector<16x64xf32>, vector<64x72xf32>, vector<16x72xf32> -> vector<16x72xf32>
    %33 = vector.broadcast %13 : vector<1x72xf32> to vector<16x72xf32>
    %34 = arith.addf %32, %33 : vector<16x72xf32>
    %c0_15 = arith.constant 0 : index
    %c0_16 = arith.constant 0 : index
    %c0_17 = arith.constant 0 : index
    %35 = vector.load %arg5[%c0_15, %c0_16, %c0_17] : memref<1x16x72xf32, #tpu.memory_space<vmem>>, vector<1x16x72xf32>
    %36 = vector.shape_cast %35 : vector<1x16x72xf32> to vector<16x72xf32>
    %37 = vector.shape_cast %34 : vector<16x72xf32> to vector<1x16x72xf32>
    tpu.vector_store %arg5[%c0_15, %c0_16, %c0_17], %37 {strides = array<i32>} : memref<1x16x72xf32, #tpu.memory_space<vmem>>, vector<1x16x72xf32>,
    return
  }
  func.func @transform_0(%arg0: i32) -> (i32, i32, i32) {
    %c0_i32 = arith.constant 0 : i32
    %c0_i32_0 = arith.constant 0 : i32
    %c0_i32_1 = arith.constant 0 : i32
    return %arg0, %c0_i32, %c0_i32_0 : i32, i32, i32
  }
  func.func @transform_1(%arg0: i32) -> (i32, i32) {
    %c0_i32 = arith.constant 0 : i32
    %c0_i32_0 = arith.constant 0 : i32
    %c0_i32_1 = arith.constant 0 : i32
    return %c0_i32, %c0_i32_0 : i32, i32
  }
  func.func @transform_2(%arg0: i32) -> (i32, i32, i32) {
    %c0_i32 = arith.constant 0 : i32
    %c0_i32_0 = arith.constant 0 : i32
    %c0_i32_1 = arith.constant 0 : i32
    return %arg0, %c0_i32, %c0_i32_0 : i32, i32, i32
  }
  func.func @transform_3(%arg0: i32) -> (i32, i32, i32) {
    %c0_i32 = arith.constant 0 : i32
    %c0_i32_0 = arith.constant 0 : i32
    %c0_i32_1 = arith.constant 0 : i32
    return %arg0, %c0_i32, %c0_i32_0 : i32, i32, i32
  }
  func.func @transform_4(%arg0: i32) -> (i32, i32, i32) {
    %c0_i32 = arith.constant 0 : i32
    %c0_i32_0 = arith.constant 0 : i32
    %c0_i32_1 = arith.constant 0 : i32
    return %arg0, %c0_i32, %c0_i32_0 : i32, i32, i32
  }
}

</mosaic_0001>

<bundles_post_ra>
// kernel: generator_forward.1
= control target key start
LH: loop header
LB: loop body
LE: loop exit
PB: predicated region body
PF: predicated region fallthrough
CT: control target
= control target key end

     0   :  { %s532_s15 = smov 0   ;;  %s594_s0 = inlined_call_operand.vmem [shape: f32[3,8,32], index: 0, kind: input, shape index: {}]   ;;  %s595_s1 = inlined_call_operand.vmem [shape: f32[2,4], index: 1, kind: input, shape index: {}]   ;;  %s596_s2 = inlined_call_operand.vmem [shape: f32[3,168,72], index: 2, kind: input, shape index: {}]   ;;  %s597_s3 = inlined_call_operand.vmem [shape: f32[3,8,72], index: 3, kind: input, shape index: {}]   ;;  %s598_s4 = inlined_call_operand.vmem [shape: f32[3,16,72], index: 4, kind: output, shape index: {}]  }
   0x1 LB: > { %s462_s16 = sadd.s32 4294967295, %s505_s15   ;;  %p466_p0 = scmp.ge.s32.totalorder %s505_s15, 1  ;;  %s505_s15 = sphi %s532_s15, %s14_s15  }
   0x2   : > { %p180_p1 = scmp.lt.s32.totalorder %s505_s15, 4 }
   0x4   : > { %p181_p2 = pnand %p466_p0, %p180_p1 }
   0x5   : > { %p214_p3 = scmp.lt.s32.totalorder (!%p181_p2), %s462_s16, 2 }
   0x6   : > { %184 = sbr.rel (%p181_p2) target bundleno = 428 (0x1ac), region = 36 }
   0xb   : > { %s600_s16 = smov (!%p214_p3, %s462_s16), 2  ;;  %vm284_vm0 = vcmask 1043456   ;;  %v233_v2 = vld [vmem:[%s595_s1] sm:$0x3]  ;;  %vm280_vm1 = vcmask 31744   ;;  %vm256_vm2 = vcmask 261120  }
   0xc   : > { %s490_s17 = smul.u32 168, %s600_s16  ;;  %s467_s21 = sshll.u32 %s600_s16, 3  ;;  %vm318_vm3 = vcmask 523264   ;;  %vm380_vm4 = vcmask 588800  }
   0xd   : > { %s217_s26 = scalar_lea.vmem %s594_s0, %s467_s21  ;;  %s226_s29 = scalar_lea.vmem %s597_s3, %s467_s21 }
   0xe   : > { %s546_s20 = scalar_lea.vmem %s596_s2, %s490_s17  ;;  %v232_v9 = vld [vmem:[%s217_s26] sm:$0xff]  ;;  %s481_s30 = sshll.u32 %s600_s16, 4 }
   0xf   : > { %v237_v0 = vld [vmem:[%s546_s20 + $0x18] sm:$0xff]  ;;  %v236_v1 = vld [vmem:[%s546_s20 + $0x10] sm:$0xff]  ;;  %v238_v3 = vld [vmem:[%s546_s20 + $0x20] sm:$0xff]  ;;  %s231_s7 = scalar_lea.vmem %s598_s4, %s481_s30 }
  0x10   : > { %272 = vmatpush.msra.mxu0 %v237_v0  ;;  %v246_v4 = vld [vmem:[%s546_s20 + $0x60] sm:$0xff]  ;;  %v235_v5 = vld [vmem:[%s546_s20 + $0x8] sm:$0xff]  ;;  %473 = vmatpush.msk.msra.mxu1 %vm284_vm0, %v238_v3  ;;  %v245_v6 = vld [vmem:[%s546_s20 + $0x58] sm:$0xff] }
  0x11   : > { %482 = vmatpush.msra.mxu2 %v246_v4  ;;  %474 = vmatmul.msk.f32.vlgmr.msra.gmra.mxu1 %vm280_vm1, %v233_v2  ;;  %v244_v7 = vld [vmem:[%s546_s20 + $0x50] sm:$0xff]  ;;  %v234_v8 = vld [vmem:[%s546_s20] sm:$0xff]  ;;  %v243_v10 = vld [vmem:[%s546_s20 + $0x48] sm:$0xff] }
  0x12   : > { %273 = vmatpush.msra.mxu0 %v236_v1  ;;  %333 = vmatpush.msrb.mxu1 %v246_v4  ;;  %v242_v11 = vld [vmem:[%s546_s20 + $0x40] sm:$0xff]  ;;  %v241_v12 = vld [vmem:[%s546_s20 + $0x38] sm:$0xff]  ;;  %v240_v13 = vld [vmem:[%s546_s20 + $0x30] sm:$0xff] }
  0x13   : > { %483 = vmatpush.msra.mxu2 %v245_v6  ;;  %v239_v14 = vld [vmem:[%s546_s20 + $0x28] sm:$0xff]  ;;  %v254_v15 = vld [vmem:[%s546_s20 + $0xa0] sm:$0xff]  ;;  %v253_v16 = vld [vmem:[%s546_s20 + $0x98] sm:$0xff] }
  0x14   : > { %274 = vmatpush.msra.mxu0 %v235_v5  ;;  %334 = vmatpush.msrb.mxu1 %v245_v6  ;;  %v252_v17 = vld [vmem:[%s546_s20 + $0x90] sm:$0xff]  ;;  %v251_v18 = vld [vmem:[%s546_s20 + $0x88] sm:$0xff]  ;;  %v250_v19 = vld [vmem:[%s546_s20 + $0x80] sm:$0xff] }
  0x15   : > { %484 = vmatpush.msra.mxu2 %v244_v7  ;;  %365 = vmatpush.msra.mxu3 %v254_v15  ;;  %v255_v21 = vld [vmem:[%s226_s29] sm:$0xff]  ;;  %v249_v32 = vld [vmem:[%s546_s20 + $0x78] sm:$0xff]  ;;  %v248_v33 = vld [vmem:[%s546_s20 + $0x70] sm:$0xff] }
  0x16   : > { %275 = vmatpush.msra.mxu0 %v234_v8  ;;  %335 = vmatpush.msrb.mxu1 %v244_v7  ;;  %v312_v24 = vperm.slane %v255_v21, 0  ;;  %v247_v34 = vld [vmem:[%s546_s20 + $0x68] sm:$0xff]  ;;  %v317_v35 = vperm.slane %v255_v21, 1  ;;  %v350_v42 = vperm.slane %v255_v21, 2 }
  0x17   : > { %472 = vmatmul.msk.f32.vlgmr.msra.gmra.mxu0 %vm256_vm2, %v232_v9  ;;  %485 = vmatpush.msra.mxu2 %v243_v10 }
  0x18   : > { %336 = vmatpush.msrb.mxu1 %v243_v10  ;;  %366 = vmatpush.msra.mxu3 %v253_v16 }
  0x19   : > { %486 = vmatpush.msra.mxu2 %v242_v11 }
  0x1a   : > { %337 = vmatpush.msrb.mxu1 %v242_v11  ;;  %367 = vmatpush.msra.mxu3 %v252_v17 }
  0x1b   : > { %487 = vmatpush.msra.mxu2 %v241_v12 }
  0x1c   : > { %338 = vmatpush.msrb.mxu1 %v241_v12  ;;  %368 = vmatpush.msra.mxu3 %v251_v18 }
  0x1d   : > { %488 = vmatpush.msra.mxu2 %v240_v13 }
  0x1e   : > { %339 = vmatpush.msrb.mxu1 %v240_v13  ;;  %369 = vmatpush.msra.mxu3 %v250_v19 }
  0x1f   : > { %489 = vmatpush.msra.mxu2 %v239_v14 }
  0x20   : > { %340 = vmatpush.msrb.mxu1 %v239_v14  ;;  %370 = vmatpush.msra.mxu3 %v249_v32 }
  0x22   : > { %371 = vmatpush.msra.mxu3 %v248_v33 }
  0x24   : > { %372 = vmatpush.msra.mxu3 %v247_v34 }
  0x8e   : > { %v305_v20 = vpop.f32.mrf.mxu1 }
  0x8f   : > { %v308_v22 = vperm.slane %v305_v20, 0  ;;  %v310_v23 = vperm.slane %v305_v20, 1 }
  0x94   : > { %v277_v25 = vpop.f32.mrf.mxu0 }
  0x95   : > { %v309_v26 = vadd.f32 %v308_v22, %v277_v25  ;;  %v311_v27 = vadd.f32 %v310_v23, %v277_v25 }
  0x97   : > { %v313_v28 = vadd.f32 %v312_v24, %v309_v26  ;;  %v314_v29 = vadd.f32 %v312_v24, %v311_v27 }
  0x99   : > { %v315_v30 = vmax.f32 %v313_v28, 0.0  ;;  %v316_v31 = vmax.f32 %v314_v29, 0.0 }
  0x9b   : > { %475 = vmatmul.msk.f32.vlgmr.msrb.gmra.mxu1 %vm318_vm3, %v315_v30  ;;  %476 = vmatmul.msk.f32.vlgmr.msra.gmra.mxu2 %vm318_vm3, %v316_v31 }
 0x118   : > { %v342_v36 = vpop.f32.mrf.mxu1 }
 0x119   : > { %v343_v37 = vadd.f32 %v342_v36, %v317_v35 }
 0x11b   : > { %v348_v38 = vmax.f32 %v343_v37, 0.0 }
 0x11d   : > { %477 = vmatmul.msk.f32.vlgmr.msra.gmra.mxu3 %vm318_vm3, %v348_v38 }
 0x11e   : > { %v345_v39 = vpop.f32.mrf.mxu2 }
 0x11f   : > { %v346_v40 = vadd.f32 %v345_v39, %v317_v35 }
 0x121   : > { %v349_v41 = vmax.f32 %v346_v40, 0.0 }
 0x125   : > { %478 = vmatmul.msk.f32.gmra.mxu3 %vm318_vm3, %v349_v41 }
 0x1a0   : > { %v374_v43 = vpop.f32.mrf.mxu3 }
 0x1a1   : > { %v375_v44 = vadd.f32 %v374_v43, %v350_v42 }
 0x1a3   : > { %381 = vst.msk [vmem:[%s231_s7] sm:$0xff] %vm380_vm4, %v375_v44 }
 0x1a8   : > { %v377_v45 = vpop.f32.mrf.mxu3 }
 0x1a9   : > { %v378_v46 = vadd.f32 %v377_v45, %v350_v42 }
 0x1ab   : > { %382 = vst.msk [vmem:[%s231_s7 + $0x8] sm:$0xff] %vm380_vm4, %v378_v46 }
 0x1ac PF: > { %s14_s15 = sadd.s32 1, %s505_s15  }
 0x1ad   : > { %p11_p4 = scmp.ge.s32.totalorder %s14_s15, 5  }
 0x1af   :  { %13 = sbr.rel (!%p11_p4) target bundleno = 1 (0x1), region = 72 }

</bundles_post_ra>
